<compile_context>
chip_gen: v5e
topology: v5e:2x2
jax: 0.10.0
libtpu: 0.0.40
codegen_flags: <defaults>
</compile_context>

<pallas_src>
import math

import jax
import jax.numpy as jnp
from jax.experimental import pallas as pl
from jax.experimental.pallas import tpu as pltpu


def _round_up(x, m):
    return ((x + m - 1) // m) * m


# ----------------------------------------------------------------------------
# Pallas kernel: fused low-rank Bayesian ensemble linear
# ----------------------------------------------------------------------------
def _make_lr_linear_kernel(rank):
    def kernel(x_ref, w_ref, a_ref, g_ref, o_ref):
        """x: [1, TS, Kp]; w: [Kp, TN] (W^T, bias folded into row K);
           a: [Rp, Kp] (alpha rows of this ensemble member, bias column = 1);
           g: [Rp, TN] (gamma rows); o: [1, TS, TN] f32.  Rows 0..rank-1 are valid."""
        x = x_ref[0]                               # [TS, Kp]
        ts = x.shape[0]
        tn = o_ref.shape[2]

        # One tall MXU matmul over all ranks: [rank*TS, Kp] @ [Kp, TN] -> f32.
        xa = jnp.concatenate(
            [x * a_ref[pl.ds(r, 1), :] for r in range(rank)], axis=0)
        y = jnp.dot(xa, w_ref[...], preferred_element_type=jnp.float32)

        # Per-rank gamma scale (bf16 in HBM, f32 accumulate) and rank reduction.
        acc = jnp.zeros((ts, tn), jnp.float32)
        for r in range(rank):
            g_r = g_ref[pl.ds(r, 1), :].astype(jnp.float32)   # [1, TN], sublane-broadcast
            acc = acc + y[r * ts:(r + 1) * ts, :] * g_r
        o_ref[0] = acc

    return kernel


def pack_lr_linear_params(params, compute_dtype=jnp.bfloat16):
    """One-time per-module prep: W^T padded + cast, bias folded into extra row K."""
    W, b = params["W"], params["b"]
    n_out, k_in = W.shape
    kp = _round_up(k_in + 1, 8)                   # +1 column carries the bias
    np_ = _round_up(n_out, 128)                   # lane-dense weight / output
    wp = jnp.zeros((kp, np_), jnp.float32)
    wp = wp.at[:k_in, :n_out].set(W.T)
    wp = wp.at[k_in, :n_out].set(b)
    packed = dict(params)
    packed["w_packed"] = wp.astype(compute_dtype)
    return packed


def lr_linear_ensemble_matmul(x, w_packed, alpha, gamma, compute_dtype=jnp.bfloat16):
    """x: [M, K]; w_packed: [Kp, Np] (from pack_lr_linear_params, same compute_dtype);
       alpha: [R, E, K]; gamma: [R, E, N].  Row m of x belongs to ensemble member
       m // (M // E).  Returns [M, N] float32."""
    m_rows, k_in = x.shape
    rank, ensemble, _ = alpha.shape
    n_out = gamma.shape[-1]
    kp, np_ = w_packed.shape
    assert m_rows % ensemble == 0, "batch must be divisible by ensemble"
    s = m_rows // ensemble                        # samples per ensemble member

    ts = min(256, _round_up(s, 8))                # sample tile (sublane aligned)
    sp = _round_up(s, ts)
    tn = 128
    for cand in (512, 256, 128):                  # largest N tile dividing Np
        if np_ % cand == 0:
            tn = cand
            break
    rp = _round_up(rank, 8)                       # sublane-aligned alpha/gamma rows

    # x -> [E, Sp, Kp], bias column (index K) = 1.
    xp = jnp.zeros((ensemble, sp, kp), jnp.float32)
    xp = xp.at[:, :s, :k_in].set(x.reshape(ensemble, s, k_in))
    xp = xp.at[:, :, k_in].set(1.0)
    xp = xp.astype(compute_dtype)

    # alpha -> [E*Rp, Kp] (row e*Rp + r), bias column = 1.
    ap = jnp.zeros((ensemble, rp, kp), jnp.float32)
    ap = ap.at[:, :rank, :k_in].set(jnp.swapaxes(alpha, 0, 1))
    ap = ap.at[:, :, k_in].set(1.0)
    ap = ap.reshape(ensemble * rp, kp).astype(compute_dtype)

    # gamma -> [E*Rp, Np] in the compute dtype (bf16 by default: halves its HBM stream).
    gp = jnp.zeros((ensemble, rp, np_), jnp.float32)
    gp = gp.at[:, :rank, :n_out].set(jnp.swapaxes(gamma, 0, 1))
    gp = gp.reshape(ensemble * rp, np_).astype(compute_dtype)

    # VMEM budget from the actual block working set (double-buffered) + live values.
    esz = jnp.dtype(compute_dtype).itemsize
    block_bytes = 2 * (ts * kp * esz + kp * tn * esz + rp * kp * esz
                       + rp * tn * esz + ts * tn * 4)
    live_bytes = rank * ts * kp * esz + rank * ts * tn * 4 + ts * tn * 4
    vmem_limit = int(min(48 << 20, max(16 << 20, 2 * (block_bytes + live_bytes))))
    # TODO(synk): for very large in_features, add a K grid axis with a VMEM accumulator
    # (pl.when init/finalize) instead of keeping the full Kp contraction resident.

    out = pl.pallas_call(
        _make_lr_linear_kernel(rank),
        out_shape=jax.ShapeDtypeStruct((ensemble, sp, np_), jnp.float32),
        grid_spec=pl.GridSpec(
            grid=(ensemble, sp // ts, np_ // tn),
            in_specs=[
                pl.BlockSpec((1, ts, kp), lambda e, si, nj: (e, si, 0)),   # x rows
                pl.BlockSpec((kp, tn), lambda e, si, nj: (0, nj)),         # W^T (+bias row)
                pl.BlockSpec((rp, kp), lambda e, si, nj: (e, 0)),          # alpha rows of e
                pl.BlockSpec((rp, tn), lambda e, si, nj: (e, nj)),         # gamma rows of e
            ],
            out_specs=pl.BlockSpec((1, ts, tn), lambda e, si, nj: (e, si, nj)),
        ),
        compiler_params=pltpu.CompilerParams(
            dimension_semantics=("parallel", "parallel", "parallel"),
            vmem_limit_bytes=vmem_limit),
    )(xp, w_packed, ap, gp)
    return out[:, :s, :n_out].reshape(m_rows, n_out)


# ----------------------------------------------------------------------------
# Module glue (sampling, KL) in plain JAX
# ----------------------------------------------------------------------------
def sample_alpha_gamma(key, params, ensemble):
    """Per-ensemble-member posterior samples.  The repeat over num_sample is NOT
    materialized; the kernel broadcasts per ensemble member."""
    rank, fin = params["alpha_mu"].shape
    fout = params["gamma_mu"].shape[1]
    alpha_sigma = jax.nn.softplus(params["alpha_rho"])
    gamma_sigma = jax.nn.softplus(params["gamma_rho"])
    k1, k2 = jax.random.split(key)
    alpha_eps = jax.random.normal(k1, (rank, ensemble, fin), dtype=jnp.float32)
    gamma_eps = jax.random.normal(k2, (rank, ensemble, fout), dtype=jnp.float32)
    alpha = params["alpha_mu"][:, None, :] + alpha_eps * alpha_sigma[:, None, :]
    gamma = params["gamma_mu"][:, None, :] + gamma_eps * gamma_sigma[:, None, :]
    return alpha, gamma, alpha_sigma, gamma_sigma


def calculate_kl(mu_q, sig_q, mu_p, sig_p):
    return 0.5 * jnp.sum(2.0 * jnp.log(sig_p / sig_q) - 1.0
                         + (sig_q / sig_p) ** 2 + ((mu_p - mu_q) / sig_p) ** 2)


def kl_loss(params, alpha_sigma, gamma_sigma, prior_mu, prior_sigma):
    kl = 0.0
    for r in range(params["alpha_mu"].shape[0]):
        kl = kl + calculate_kl(prior_mu, prior_sigma, params["alpha_mu"][r], alpha_sigma[r])
        kl = kl + calculate_kl(prior_mu, prior_sigma, params["gamma_mu"][r], gamma_sigma[r])
    return kl


def lr_bayes_linear_forward(packed_params, x, ensemble, key, sample=True,
                            compute_dtype=jnp.bfloat16):
    """Matches LRBayesLinear.forward(input, sample=True), adaptive=False path."""
    p = packed_params
    rank, fin = p["alpha_mu"].shape
    fout = p["gamma_mu"].shape[1]
    # Sigmas computed unconditionally so kl_loss works even when sample=False.
    alpha_sigma = jax.nn.softplus(p["alpha_rho"])
    gamma_sigma = jax.nn.softplus(p["gamma_rho"])
    if sample:
        alpha, gamma, alpha_sigma, gamma_sigma = sample_alpha_gamma(key, p, ensemble)
    else:
        alpha = jnp.broadcast_to(p["alpha_mu"][:, None, :], (rank, ensemble, fin))
        gamma = jnp.broadcast_to(p["gamma_mu"][:, None, :], (rank, ensemble, fout))
    # TODO(synk): adaptive quantizer branches (AutoLoRa / BayesianBits / HardConcrete)
    # are not implemented; default adaptive=False path only.
    out = lr_linear_ensemble_matmul(x, p["w_packed"], alpha, gamma, compute_dtype)
    return out, alpha, gamma, alpha_sigma, gamma_sigma


# ----------------------------------------------------------------------------
# Parameter init (matching the PyTorch __init__ / reset_parameters shapes)
# ----------------------------------------------------------------------------
def init_lr_bayes_linear(key, fin, fout, rank):
    keys = jax.random.split(key, 5)
    std = math.sqrt(2.0 / fin)   # kaiming_normal_, a=0, fan_in, leaky_relu
    W = std * jax.random.normal(keys[0], (fout, fin), dtype=jnp.float32)
    b = jnp.zeros((fout,), jnp.float32)
    mu0 = 1.0 / math.sqrt(rank)
    alpha_mu = mu0 + 0.1 * jax.random.normal(keys[1], (rank, fin), dtype=jnp.float32)
    alpha_rho = -3.0 + 0.1 * jax.random.normal(keys[2], (rank, fin), dtype=jnp.float32)
    gamma_mu = mu0 + 0.1 * jax.random.normal(keys[3], (rank, fout), dtype=jnp.float32)
    gamma_rho = -3.0 + 0.1 * jax.random.normal(keys[4], (rank, fout), dtype=jnp.float32)
    return dict(W=W, b=b, alpha_mu=alpha_mu, alpha_rho=alpha_rho,
                gamma_mu=gamma_mu, gamma_rho=gamma_rho)


if __name__ == "__main__":
    key = jax.random.PRNGKey(0)
    ensemble, rank = 4, 4
    num_sample = 2
    in_features, out_features = 64, 32
    batch = ensemble * num_sample  # 8

    pkey, xkey, skey = jax.random.split(key, 3)
    params = init_lr_bayes_linear(pkey, in_features, out_features, rank)
    packed = pack_lr_linear_params(params)          # one-time W^T / bias prep
    x = jax.random.normal(xkey, (batch, in_features), dtype=jnp.float32)

    out, alpha, gamma, a_sig, g_sig = lr_bayes_linear_forward(packed, x, ensemble, skey)
    jax.block_until_ready(out)
    assert out.shape == (batch, out_features), out.shape

    # f32 reference of the same math (repeat_interleave + per-rank bias, as in PyTorch).
    alpha_rep = jnp.repeat(alpha, num_sample, axis=1)     # [R, M, fin]
    gamma_rep = jnp.repeat(gamma, num_sample, axis=1)     # [R, M, fout]
    ref = jnp.sum(
        (jnp.einsum("rmk,nk->rmn", x[None] * alpha_rep, params["W"]) + params["b"])
        * gamma_rep, axis=0)
    err = jnp.max(jnp.abs(out - ref))
    tol = 0.05 + 0.05 * jnp.max(jnp.abs(ref))   # bf16 MXU / bf16 gamma vs f32 reference
    assert bool(err < tol), float(err)

    # KL term (matches LRBayesLinear.kl_loss); works because sigmas are always returned.
    kl = kl_loss(params, a_sig, g_sig, 1.0 / math.sqrt(rank), 0.1)
    jax.block_until_ready(kl)

    print("KERNEL_OK")
</pallas_src>

<mosaic_0001>
module attributes {stable_mosaic.version = 11 : i64} {
  func.func @kernel(%arg0: i32, %arg1: i32, %arg2: i32, %arg3: memref<1x8x72xbf16, #tpu.memory_space<vmem>>, %arg4: memref<72x128xbf16, #tpu.memory_space<vmem>>, %arg5: memref<8x72xbf16, #tpu.memory_space<vmem>>, %arg6: memref<8x128xbf16, #tpu.memory_space<vmem>>, %arg7: memref<1x8x128xf32, #tpu.memory_space<vmem>>) attributes {dimension_semantics = [#tpu.dimension_semantics<parallel>, #tpu.dimension_semantics<parallel>, #tpu.dimension_semantics<parallel>], iteration_bounds = array<i64: 4, 1, 1>, scalar_prefetch = 0 : i64, scratch_operands = 0 : i64, tpu.core_type = #tpu.core_type<tc>, window_params = [{transform_indices = @transform_0, window_bounds = array<i64: 1, 8, 72>}, {transform_indices = @transform_1, window_bounds = array<i64: 72, 128>}, {transform_indices = @transform_2, window_bounds = array<i64: 8, 72>}, {transform_indices = @transform_3, window_bounds = array<i64: 8, 128>}, {transform_indices = @transform_4, window_bounds = array<i64: 1, 8, 128>}]} {
    %c0 = arith.constant 0 : index
    %c0_0 = arith.constant 0 : index
    %c0_1 = arith.constant 0 : index
    %0 = vector.load %arg3[%c0, %c0_0, %c0_1] : memref<1x8x72xbf16, #tpu.memory_space<vmem>>, vector<1x8x72xbf16>
    %1 = vector.shape_cast %0 : vector<1x8x72xbf16> to vector<8x72xbf16>
    %c0_2 = arith.constant 0 : index
    %c0_3 = arith.constant 0 : index
    %2 = vector.load %arg5[%c0_2, %c0_3] : memref<8x72xbf16, #tpu.memory_space<vmem>>, vector<1x72xbf16>
    %3 = vector.broadcast %2 : vector<1x72xbf16> to vector<8x72xbf16>
    %4 = arith.mulf %1, %3 : vector<8x72xbf16>
    %c1 = arith.constant 1 : index
    %c0_4 = arith.constant 0 : index
    %5 = vector.load %arg5[%c1, %c0_4] : memref<8x72xbf16, #tpu.memory_space<vmem>>, vector<1x72xbf16>
    %6 = vector.broadcast %5 : vector<1x72xbf16> to vector<8x72xbf16>
    %7 = arith.mulf %1, %6 : vector<8x72xbf16>
    %c2 = arith.constant 2 : index
    %c0_5 = arith.constant 0 : index
    %8 = vector.load %arg5[%c2, %c0_5] : memref<8x72xbf16, #tpu.memory_space<vmem>>, vector<1x72xbf16>
    %9 = vector.broadcast %8 : vector<1x72xbf16> to vector<8x72xbf16>
    %10 = arith.mulf %1, %9 : vector<8x72xbf16>
    %c3 = arith.constant 3 : index
    %c0_6 = arith.constant 0 : index
    %11 = vector.load %arg5[%c3, %c0_6] : memref<8x72xbf16, #tpu.memory_space<vmem>>, vector<1x72xbf16>
    %12 = vector.broadcast %11 : vector<1x72xbf16> to vector<8x72xbf16>
    %13 = arith.mulf %1, %12 : vector<8x72xbf16>
    %14 = tpu.concatenate %4, %7, %10, %13 in 0 : vector<8x72xbf16>, vector<8x72xbf16>, vector<8x72xbf16>, vector<8x72xbf16> -> vector<32x72xbf16>
    %c0_7 = arith.constant 0 : index
    %c0_8 = arith.constant 0 : index
    %15 = vector.load %arg4[%c0_7, %c0_8] : memref<72x128xbf16, #tpu.memory_space<vmem>>, vector<72x128xbf16>
    %cst = arith.constant dense<0.000000e+00> : vector<32x128xf32>
    %16 = tpu.matmul %14, %15, %cst {dimension_numbers = #tpu.dot_dimension_numbers<[1], [0], [0], [1], [0, 0, 1, 1], [], []>} : vector<32x72xbf16>, vector<72x128xbf16>, vector<32x128xf32> -> vector<32x128xf32>
    %cst_9 = arith.constant 0.000000e+00 : f32
    %17 = vector.broadcast %cst_9 : f32 to vector<8x128xf32>
    %c0_10 = arith.constant 0 : index
    %c0_11 = arith.constant 0 : index
    %18 = vector.load %arg6[%c0_10, %c0_11] : memref<8x128xbf16, #tpu.memory_space<vmem>>, vector<1x128xbf16>
    %19 = arith.extf %18 : vector<1x128xbf16> to vector<1x128xf32>
    %20 = vector.extract_strided_slice %16 {offsets = [0, 0], sizes = [8, 128], strides = [1, 1]} : vector<32x128xf32> to vector<8x128xf32>
    %21 = vector.broadcast %19 : vector<1x128xf32> to vector<8x128xf32>
    %22 = arith.mulf %20, %21 : vector<8x128xf32>
    %23 = arith.addf %17, %22 : vector<8x128xf32>
    %c1_12 = arith.constant 1 : index
    %c0_13 = arith.constant 0 : index
    %24 = vector.load %arg6[%c1_12, %c0_13] : memref<8x128xbf16, #tpu.memory_space<vmem>>, vector<1x128xbf16>
    %25 = arith.extf %24 : vector<1x128xbf16> to vector<1x128xf32>
    %26 = vector.extract_strided_slice %16 {offsets = [8, 0], sizes = [8, 128], strides = [1, 1]} : vector<32x128xf32> to vector<8x128xf32>
    %27 = vector.broadcast %25 : vector<1x128xf32> to vector<8x128xf32>
    %28 = arith.mulf %26, %27 : vector<8x128xf32>
    %29 = arith.addf %23, %28 : vector<8x128xf32>
    %c2_14 = arith.constant 2 : index
    %c0_15 = arith.constant 0 : index
    %30 = vector.load %arg6[%c2_14, %c0_15] : memref<8x128xbf16, #tpu.memory_space<vmem>>, vector<1x128xbf16>
    %31 = arith.extf %30 : vector<1x128xbf16> to vector<1x128xf32>
    %32 = vector.extract_strided_slice %16 {offsets = [16, 0], sizes = [8, 128], strides = [1, 1]} : vector<32x128xf32> to vector<8x128xf32>
    %33 = vector.broadcast %31 : vector<1x128xf32> to vector<8x128xf32>
    %34 = arith.mulf %32, %33 : vector<8x128xf32>
    %35 = arith.addf %29, %34 : vector<8x128xf32>
    %c3_16 = arith.constant 3 : index
    %c0_17 = arith.constant 0 : index
    %36 = vector.load %arg6[%c3_16, %c0_17] : memref<8x128xbf16, #tpu.memory_space<vmem>>, vector<1x128xbf16>
    %37 = arith.extf %36 : vector<1x128xbf16> to vector<1x128xf32>
    %38 = vector.extract_strided_slice %16 {offsets = [24, 0], sizes = [8, 128], strides = [1, 1]} : vector<32x128xf32> to vector<8x128xf32>
    %39 = vector.broadcast %37 : vector<1x128xf32> to vector<8x128xf32>
    %40 = arith.mulf %38, %39 : vector<8x128xf32>
    %41 = arith.addf %35, %40 : vector<8x128xf32>
    %c0_18 = arith.constant 0 : index
    %c0_19 = arith.constant 0 : index
    %c0_20 = arith.constant 0 : index
    %42 = vector.load %arg7[%c0_18, %c0_19, %c0_20] : memref<1x8x128xf32, #tpu.memory_space<vmem>>, vector<1x8x128xf32>
    %43 = vector.shape_cast %42 : vector<1x8x128xf32> to vector<8x128xf32>
    %44 = vector.shape_cast %41 : vector<8x128xf32> to vector<1x8x128xf32>
    tpu.vector_store %arg7[%c0_18, %c0_19, %c0_20], %44 {strides = array<i32>} : memref<1x8x128xf32, #tpu.memory_space<vmem>>, vector<1x8x128xf32>,
    return
  }
  func.func @transform_0(%arg0: i32, %arg1: i32, %arg2: i32) -> (i32, i32, i32) {
    %c0_i32 = arith.constant 0 : i32
    %c0_i32_0 = arith.constant 0 : i32
    return %arg0, %arg1, %c0_i32 : i32, i32, i32
  }
  func.func @transform_1(%arg0: i32, %arg1: i32, %arg2: i32) -> (i32, i32) {
    %c0_i32 = arith.constant 0 : i32
    %c0_i32_0 = arith.constant 0 : i32
    return %c0_i32, %arg2 : i32, i32
  }
  func.func @transform_2(%arg0: i32, %arg1: i32, %arg2: i32) -> (i32, i32) {
    %c0_i32 = arith.constant 0 : i32
    %c0_i32_0 = arith.constant 0 : i32
    return %arg0, %c0_i32 : i32, i32
  }
  func.func @transform_3(%arg0: i32, %arg1: i32, %arg2: i32) -> (i32, i32) {
    %c0_i32 = arith.constant 0 : i32
    return %arg0, %arg2 : i32, i32
  }
  func.func @transform_4(%arg0: i32, %arg1: i32, %arg2: i32) -> (i32, i32, i32) {
    %c0_i32 = arith.constant 0 : i32
    return %arg0, %arg1, %arg2 : i32, i32, i32
  }
}

</mosaic_0001>

<bundles_post_ra>
// kernel: tpu_custom_call.1
= control target key start
LH: loop header
LB: loop body
LE: loop exit
PB: predicated region body
PF: predicated region fallthrough
CT: control target
= control target key end

     0   :  { %s1186_s0 = inlined_call_operand.hbm [shape: bf16[4,8,72], index: 0, kind: input, shape index: {}]   ;;  %s1187_s1 = inlined_call_operand.hbm [shape: bf16[72,128], index: 1, kind: input, shape index: {}]   ;;  %s1188_s2 = inlined_call_operand.hbm [shape: bf16[32,72], index: 2, kind: input, shape index: {}]   ;;  %s1189_s3 = inlined_call_operand.hbm [shape: bf16[32,128], index: 3, kind: input, shape index: {}]   ;;  %s1190_s4 = inlined_call_operand.hbm [shape: f32[4,8,128], index: 4, kind: output, shape index: {}]  }
   0x1   :  { %1191 = sst [smem:[#allocation14_spill]] %s1186_s0 }
   0x2   :  { %1192 = sst [smem:[#allocation15_spill]] %s1187_s1 }
   0x3   :  { %1193 = sst [smem:[#allocation16_spill]] %s1188_s2 }
   0x4   :  { %9 = vsyncpa [#allocation3], 0 }
   0x5   :  { %11 = vsyncpa [#allocation3 + $0x1], 0 }
   0x6   :  { %12 = vsyncpa [#allocation6], 0 }
   0x7   :  { %13 = vsyncpa [#allocation4], 0 }
   0x8   :  { %15 = vsyncpa [#allocation4 + $0x1], 0  ;;  %s994_s15 = smov 0   ;;  %s996_s16 = smov 0  }
   0x9   :  { %s998_s17 = smov 0   ;;  %s1000_s18 = smov 0  }
   0xa   :  { %s1002_s19 = smov 0   ;;  %s1004_s20 = smov 0  }
   0xb LB: > { %s1025_s21 = sadd.s32 4294967295, %s964_s20   ;;  %s622_s22 = sadd.s32 4294967294, %s964_s20   ;;  %s964_s20 = sphi %s1004_s20, %s21_s20   ;;  %s960_s19 = sphi %s1002_s19, %s1207_s19   ;;  %s956_s18 = sphi %s1000_s18, %s1206_s18   ;;  %s952_s17 = sphi %s998_s17, %s1205_s17   ;;  %s948_s16 = sphi %s996_s16, %s1204_s16   ;;  %s944_s15 = sphi %s994_s15, %s1203_s15  }
   0xc   : > { %s40_s23 = sadd.s32 1, %s960_s19  ;;  %s49_s24 = sadd.s32 1, %s952_s17 }
   0xd   : > { %p42_p0 = scmp.ge.s32.totalorder %s40_s23, 4  ;;  %p56_p1 = scmp.ne.s32.totalorder %s952_s17, %s948_s16 }
   0xe   : > { %p57_p2 = scmp.eq.s32.totalorder %s964_s20, 0  ;;  %p62_p3 = scmp.ne.s32.totalorder %s948_s16, %s944_s15 }
   0xf   : > { %s1209_s23 = smov (%p42_p0, %s40_s23), 0  ;;  %p170_p5 = scmp.eq.s32.totalorder %s1025_s21, 3 }
  0x10   : > { %p1037_p4 = por %p57_p2, %p56_p1  ;;  %s44_s26 = ssub.s32 %s960_s19, %s1209_s23 }
  0x11   : > { %p176_p6 = scmp.eq.s32.totalorder %s622_s22, 3  ;;  %p47_p7 = scmp.eq.s32.totalorder %s44_s26, 0 }
  0x12   : > { %p1044_p8 = por %p170_p5, %p56_p1  ;;  %p700_p10 = scmp.lt.s32.totalorder %s964_s20, 4 }
  0x13   : > { %p1051_p9 = por %p176_p6, %p62_p3  ;;  %s212_s30 = sand.u32 1, %s964_s20  }
  0x14   : > { %s1056_s29 = scalar_select %p47_p7, %s952_s17, %s49_s24  }
  0x15   : > { %s214_s5 = sand.u32 1, %s952_s17   ;;  %s1064_s7 = sshll.u32 %s960_s19, 2 }
  0x16   : > { %s1061_s6 = sshll.u32 %s214_s5, 2  ;;  %s1197_s0 = sld [smem:[#allocation14_spill]] }
  0x17   : > { %s216_s11 = scalar_lea.vmem [#allocation2], %s1061_s6  ;;  %p1073_p11 = pnand %p700_p10, %p1037_p4 }
  0x18   : > { %s225_s12 = sshll.u32 %s216_s11, 4  ;;  %s1199_s2 = sld [smem:[#allocation16_spill]]  ;;  %s226_s12 = int_to_ptr.vmem [resolvable:$true] %s225_s12 }
  0x19   : > { %s1081_s8 = scalar_lea.sflag [#allocation3], %s212_s30  ;;  %s236_s25 = scalar_lea.vmem [#allocation7], %s1061_s6 }
  0x1a   : > { %s244_s9 = sshll.u32 %s236_s25, 4  ;;  %p63_p12 = scmp.eq.s32.totalorder %s1025_s21, 0  ;;  %s245_s9 = int_to_ptr.vmem [resolvable:$true] %s244_s9 }
  0x1b   : > { %p623_p13 = scmp.ge.s32.totalorder %s964_s20, 1  ;;  %p183_p0 = scmp.lt.s32.totalorder %s964_s20, 5 }
  0x1c   : > { %s221_s10 = scalar_lea.hbm %s1197_s0, %s1064_s7  ;;  %p1098_p1 = por %p63_p12, %p62_p3 }
  0x1d   : > { %s223_s13 = sshll.u32 %s221_s10, 4  ;;  %s1201_s1 = sld [smem:[#allocation15_spill]]  ;;  %s224_s13 = int_to_ptr.hbm [resolvable:$true] %s223_s13 }
  0x1e   : > { %s240_s26 = scalar_lea.hbm %s1199_s2, %s1064_s7  ;;  %p1105_p2 = pnand %p623_p13, %p183_p0 }
  0x1f   : > { %s242_s5 = sshll.u32 %s240_s26, 4  ;;  %s966_s22 = smov [#allocation5]   ;;  %s243_s5 = int_to_ptr.hbm [resolvable:$true] %s242_s5 }
  0x20   : > { %688 = dma.hbm_to_vmem [thread:$0]  (!%p1073_p11), %s224_s13, 64, %s226_s12, %s1081_s8  }
  0x21   : > { %691 = dma.hbm_to_vmem [thread:$0]  (!%p1073_p11), %s243_s5, 64, %s245_s9, %s1081_s8  }
  0x22   : > { %p681_p4 = pneg %p1105_p2  ;;  %s198_s24 = sshll.u32 %s966_s22, 4  ;;  %s199_s24 = int_to_ptr.vmem [resolvable:$true] %s198_s24 }
  0x23   : > { %s196_s12 = sshll.u32 %s1201_s1, 4  ;;  %s260_s25 = scalar_lea.hbm %s1189_s3, %s1064_s7  ;;  %s197_s12 = int_to_ptr.hbm [resolvable:$true] %s196_s12 }
  0x24   : > { %p682_p3 = pnand %p681_p4, %p63_p12  ;;  %s255_s9 = scalar_lea.vmem [#allocation8], %s1061_s6 }
  0x25   : > { %s264_s10 = sshll.u32 %s255_s9, 4  ;;  %s262_s11 = sshll.u32 %s260_s25, 4  ;;  %s263_s11 = int_to_ptr.hbm [resolvable:$true] %s262_s11  ;;  %s265_s10 = int_to_ptr.vmem [resolvable:$true] %s264_s10 }
  0x26   : > { %s967_s0 = smov 64   ;;  %s968_s1 = smov 4  }
  0x27   : > { %684 = dma.hbm_to_vmem [thread:$0]  (!%p682_p3), %s197_s12, 576, %s199_s24, [#allocation6], %s967_s0, %s967_s0, %s968_s1  }
  0x28   : > { %694 = dma.hbm_to_vmem [thread:$0]  (!%p1073_p11), %s263_s11, 64, %s265_s10, %s1081_s8  }
  0x29   : > { %273 = sbr.rel (%p1105_p2) target bundleno = 221 (0xdd), region = 36  ;;  %s275_s22 = sand.u32 (!%p1105_p2), 1, %s1025_s21  }
  0x2a   : > { %s1125_s2 = sand.u32 (!%p1105_p2), 1, %s948_s16   ;;  %s276_s7 = scalar_lea.sflag (!%p1105_p2), [#allocation3], %s275_s22 }
  0x2b   : > { %s1128_s6 = sshll.u32 (!%p1105_p2), %s1125_s2, 2 }
  0x2c   : > { %s279_s26 = scalar_lea.vmem (!%p1105_p2), [#allocation2], %s1128_s6 }
  0x2e   : > { %927 = dma.done.wait (%p1098_p1), %s276_s7, 64  }
  0x2f   : > { %929 = vsyncadd (%p1098_p1), %s276_s7, 4294967232 }
  0x30   : > { %931 = dma.done.wait (%p63_p12), [#allocation6], 576  }
  0x31   : > { %933 = vsyncadd (%p63_p12), [#allocation6], 4294966720  ;;  %s294_s0 = scalar_lea.vmem [#allocation7], %s1128_s6 }
  0x32   : > { %935 = dma.done.wait (%p1098_p1), %s276_s7, 128  }
  0x33   : > { %937 = vsyncadd (%p1098_p1), %s276_s7, 4294967168  ;;  %v394_v0 = vld [vmem:[#allocation5 + $0x20] sm:$0xf]  ;;  %vm379_vm0 = vcmask 1043456   ;;  %v342_v2 = vld [vmem:[%s294_s0] sm:$0x1] }
  0x34   : > { %v412_v1 = vunpack.c.l.b16 %v394_v0  ;;  %v358_v3 = vld [vmem:[%s294_s0] sm:$0x2]  ;;  %v344_v5 = vpack.i.b16 %v342_v2, %v342_v2  ;;  %v351_v6 = vshrl.u32 %v342_v2, 16  ;;  %v341_v8 = vld [vmem:[%s279_s26] sm:$0xf]  ;;  %v662_v21 = vld [vmem:[#allocation5 + $0x10] sm:$0xff] }
  0x35   : > { %v360_v7 = vpack.i.b16 %v358_v3, %v358_v3  ;;  %v366_v9 = vshrl.u32 %v358_v3, 16  ;;  %v663_v13 = vld [vmem:[#allocation5 + $0x18] sm:$0xff]  ;;  %v347_v16 = vunpack.c.l.bf16 %v341_v8  ;;  %v661_v28 = vld [vmem:[#allocation5 + $0x8] sm:$0xff]  ;;  %v660_v34 = vld [vmem:[#allocation5] sm:$0xff]  ;;  %vm422_vm1 = vcmask 588800   ;;  %s304_s1 = scalar_lea.vmem [#allocation8], %s1128_s6 }
  0x36   : > { %v417_v4 = vpack.c.b16 %v412_v1, %v412_v1  ;;  %v346_v11 = vperm.slane %v344_v5, 0  ;;  %v352_v12 = vpack.i.b16 %v351_v6, %v351_v6  ;;  %v449_v40 = vld [vmem:[%s304_s1] sm:$0x1]  ;;  %v457_v43 = vld [vmem:[%s304_s1] sm:$0x2]  ;;  %s637_s21 = sshll.u32 %s1125_s2, 3 }
  0x37   : > { %v362_v14 = vperm.slane %v360_v7, 1  ;;  %v367_v15 = vpack.i.b16 %v366_v9, %v366_v9  ;;  %v450_v44 = vunpack.c.l.bf16 %v449_v40  ;;  %v458_v45 = vunpack.c.l.bf16 %v457_v43  ;;  %s657_s14 = sshll.u32 %s956_s18, 3  ;;  %s339_s13 = scalar_lea.vmem [#allocation9], %s637_s21 }
  0x38   : > { %v428_v10 = vsel %vm379_vm0, %v417_v4, 0  ;;  %v354_v17 = vperm.slane %v352_v12, 0  ;;  %v348_v19 = vunpack.c.l.bf16 %v346_v11  ;;  %s479_s12 = scalar_lea.hbm %s1190_s4, %s657_s14  ;;  %s481_s24 = sshll.u32 %s339_s13, 4  ;;  %s482_s24 = int_to_ptr.vmem [resolvable:$true] %s481_s24 }
  0x39   : > { %433 = vmatpush.bf16.msra.mxu0 %v428_v10  ;;  %664 = vmatpush.bf16.msra.mxu1 %v428_v10  ;;  %v369_v18 = vperm.slane %v367_v15, 1  ;;  %v363_v22 = vunpack.c.l.bf16 %v362_v14  ;;  %v451_v46 = vperm.slane %v450_v44, 0  ;;  %v454_v47 = vperm.slane %v450_v44, 1  ;;  %s483_s5 = sshll.u32 %s479_s12, 4  ;;  %s467_s18 = scalar_lea.sflag [#allocation4], %s1125_s2  ;;  %s484_s5 = int_to_ptr.hbm [resolvable:$true] %s483_s5 }
  0x3a   : > { %v355_v20 = vunpack.c.l.bf16 %v354_v17  ;;  %v349_v26 = vmul.f32 %v348_v19, %v347_v16  ;;  %v459_v48 = vperm.slane %v458_v45, 2  ;;  %v462_v52 = vperm.slane %v458_v45, 3  ;;  %s888_s25 = sshra.s32 %s484_s5, 4  ;;  %s894_s22 = scalar_lea.hbm %s1190_s4, 32  ;;  %s889_s25 = int_to_ptr.hbm [resolvable:$true] %s888_s25 }
  0x3b   : > { %v370_v23 = vunpack.c.l.bf16 %v369_v18  ;;  %v364_v29 = vmul.f32 %v363_v22, %v347_v16  ;;  %s890_s9 = scalar_lea.hbm %s889_s25, 8  ;;  %p895_p10 = scmp.lt.s32.totalorder %s889_s25, %s1190_s4 }
  0x3c   : > { %v356_v24 = vmul.f32 %v355_v20, %v347_v16  ;;  %v350_v33 = vpack.c.bf16 %v349_v26, %v349_v26  ;;  %p891_p5 = scmp.ne.s32.totalorder %s889_s25, %s890_s9  ;;  %p896_p11 = scmp.lt.s32.totalorder %s894_s22, %s890_s9 }
  0x3d   : > { %434 = vmatpush.bf16.msra.mxu0 %v663_v13  ;;  %665 = vmatpush.bf16.msra.mxu1 %v663_v13  ;;  %v371_v25 = vmul.f32 %v370_v23, %v347_v16  ;;  %v365_v36 = vpack.c.bf16 %v364_v29, %v364_v29 }
  0x3e   : > { %v357_v27 = vpack.c.bf16 %v356_v24, %v356_v24  ;;  %p892_p6 = pnand %p891_p5, %p1044_p8  ;;  %p897_p12 = por %p896_p11, %p895_p10 }
  0x3f   : > { %v372_v30 = vpack.c.bf16 %v371_v25, %v371_v25 }
  0x40   : > { %v374_v31 = vunpack.c.l.b16 %v357_v27  ;;  %p893_p7 = pneg %p892_p6 }
  0x41   : > { %435 = vmatpush.bf16.msra.mxu0 %v662_v21  ;;  %666 = vmatpush.bf16.msra.mxu1 %v662_v21  ;;  %v377_v32 = vunpack.c.l.b16 %v372_v30 }
  0x42   : > { %v375_v35 = vpack.c.b16 %v374_v31, %v374_v31  ;;  %p898_p13 = pnand %p897_p12, %p893_p7 }
  0x43   : > { %v378_v37 = vpack.c.b16 %v377_v32, %v377_v32 }
  0x44   : > { %v382_v38 = vsel %vm379_vm0, %v350_v33, %v375_v35 }
  0x45   : > { %436 = vmatpush.bf16.msra.mxu0 %v661_v28  ;;  %667 = vmatpush.bf16.msra.mxu1 %v661_v28  ;;  %v385_v39 = vsel %vm379_vm0, %v365_v36, %v378_v37 }
  0x49   : > { %437 = vmatpush.bf16.msra.mxu0 %v660_v34  ;;  %668 = vmatpush.bf16.msra.mxu1 %v660_v34 }
  0x4c   : > { %654 = vmatmul.msk.bf16.vlgmr.msra.gmra.mxu0 %vm422_vm1, %v382_v38  ;;  %655 = vmatmul.msk.bf16.vlgmr.msra.gmra.mxu1 %vm422_vm1, %v385_v39 }
  0xc9   : > { %v439_v41 = vpop.f32.mrf.mxu0  ;;  %v444_v42 = vpop.f32.mrf.mxu1 }
  0xca   : > { %v452_v50 = vmul.f32 %v451_v46, %v439_v41  ;;  %v460_v54 = vmul.f32 %v459_v48, %v444_v42 }
  0xd1   : > { %v441_v49 = vpop.f32.mrf.mxu0  ;;  %v446_v53 = vpop.f32.mrf.mxu1 }
  0xd2   : > { %v455_v51 = vmul.f32 %v454_v47, %v441_v49  ;;  %v463_v57 = vmul.f32 %v462_v52, %v446_v53 }
  0xd4   : > { %v456_v55 = vadd.f32 %v455_v51, %v452_v50 }
  0xd6   : > { %v461_v56 = vadd.f32 %v460_v54, %v456_v55 }
  0xd8   : > { %v464_v58 = vadd.f32 %v463_v57, %v461_v56 }
  0xda   : > { %465 = vst [vmem:[%s339_s13] sm:$0xff] %v464_v58 }
  0xdb   : > { %901 = shalt.err (!%p898_p13)
}
  0xdc   : > { %679 = dma.vmem_to_hbm [thread:$0]  (%p1044_p8), %s482_s24, 128, %s484_s5, %s467_s18  }
  0xdd PF: > { %p702_p0 = scmp.ge.s32.totalorder %s964_s20, 2  ;;  %s495_s2 = sand.u32 1, %s944_s15  }
  0xde   : > { %s496_s26 = scalar_lea.sflag [#allocation4], %s495_s2 }
  0xdf   : > { %p696_p1 = pnand %p702_p0, %p1051_p9 }
  0xe1   : > { %p697_p2 = pneg %p696_p1 }
  0xe3   : > { %939 = dma.done.wait (%p697_p2), %s496_s26, 128  }
  0xe4   : > { %941 = vsyncadd (%p697_p2), %s496_s26, 4294967168  ;;  %s21_s20 = sadd.s32 1, %s964_s20   ;;  %s1203_s15 = smov %s948_s16 }
  0xe5   : > { %p18_p4 = scmp.ge.s32.totalorder %s21_s20, 6   ;;  %s1204_s16 = smov %s952_s17 }
  0xe6   : > { %s1205_s17 = smov %s1056_s29  ;;  %s1206_s18 = smov %s960_s19 }
  0xe7   : > { %s1207_s19 = smov %s1209_s23  ;;  %20 = sbr.rel (!%p18_p4) target bundleno = 11 (0xb), region = 108 }
  0xec   :  { %502 = vsyncpa [#allocation3], 1 }
  0xed   :  { %504 = vsyncpa [#allocation3 + $0x1], 1 }
  0xee   :  { %505 = vsyncpa [#allocation6], 1 }
  0xef   :  { %506 = vsyncpa [#allocation4], 1 }
  0xf0   :  { %508 = vsyncpa [#allocation4 + $0x1], 1 }

</bundles_post_ra>
